<compile_context>
chip_gen: v6e
topology: v6e:2x2x1
jax: 0.10.0
libtpu: 0.0.40
codegen_flags: <defaults>
</compile_context>

<pallas_src>
import jax
import jax.numpy as jnp
from jax.experimental import pallas as pl
from jax.experimental.pallas import tpu as pltpu


def _se_kernel(x_ref, w1_ref, w2_ref, o_ref):
    # x_ref / o_ref: (C, H) f32   (B squeezed away by the BlockSpec)
    # w1_ref: (HID, C) f32  (PyTorch Linear(C, HID) weight, resident in VMEM)
    # w2_ref: (C, HID) f32  (PyTorch Linear(HID, C) weight, resident in VMEM)
    inv_h = jnp.float32(1.0 / x_ref.shape[-1])

    # Squeeze: mean over H  -> column vector (C, 1).  Keeps C on sublanes, no
    # relayout needed for the rest of the gate computation.
    y = jnp.sum(x_ref[...], axis=-1, keepdims=True) * inv_h            # (C, 1)

    # Excitation: W2 @ tanh(W1 @ y), then sigmoid.  Tiny matmuls -> MXU noise;
    # tanh / sigmoid run on the EUP slot.
    hdn = jnp.tanh(jnp.dot(w1_ref[...], y,
                           preferred_element_type=jnp.float32))        # (HID, 1)
    s = jax.nn.sigmoid(jnp.dot(w2_ref[...], hdn,
                               preferred_element_type=jnp.float32))    # (C, 1)

    # Scale: re-read x_ref (don't keep the block live across the FC) and
    # broadcast the per-channel gate over H (lanes).
    o_ref[...] = x_ref[...] * s                                        # (C, H)


def se_layer(x, w1, w2):
    """x: (B, C, H) f32; w1: (HID, C) f32; w2: (C, HID) f32 (PyTorch layouts)."""
    b, c, h = x.shape
    hid, c1 = w1.shape
    c2, hid2 = w2.shape
    assert c1 == c and c2 == c and hid2 == hid

    blk_bytes = c * h * x.dtype.itemsize
    w_bytes = (w1.size + w2.size) * 4
    # double-buffered input block + double-buffered output block + weights
    vmem_need = 4 * blk_bytes + 2 * w_bytes + (1 << 20)
    # Fused single-pass layout requires the (C, H) slab to fit v7x VMEM (64 MiB
    # physical); larger H would need a two-pass (accumulate-mean, then scale)
    # H-tiled structure.
    assert vmem_need <= (56 << 20), (
        "block too large for fused SE kernel; tile H with a two-pass structure")
    vmem_limit = min(vmem_need, 56 << 20) if vmem_need > (32 << 20) else None

    cost = pl.CostEstimate(
        flops=2 * b * c * h + 4 * b * c * hid,       # mean + scale + two FCs
        transcendentals=b * (hid + c),               # tanh + sigmoid
        bytes_accessed=2 * b * c * h * x.dtype.itemsize + w_bytes,
    )

    return pl.pallas_call(
        _se_kernel,
        out_shape=jax.ShapeDtypeStruct((b, c, h), x.dtype),
        grid=(b,),
        in_specs=[
            # x: one batch row per grid step, B squeezed -> kernel sees (C, H)
            pl.BlockSpec((None, c, h), lambda i: (i, 0, 0)),
            # weights: constant index_map -> fetched once, VMEM resident
            pl.BlockSpec((hid, c), lambda i: (0, 0)),
            pl.BlockSpec((c, hid), lambda i: (0, 0)),
        ],
        out_specs=pl.BlockSpec((None, c, h), lambda i: (i, 0, 0)),
        compiler_params=pltpu.CompilerParams(
            dimension_semantics=("parallel",),       # shard B over TCs (v7x)
            vmem_limit_bytes=vmem_limit,
        ),
        cost_estimate=cost,
    )(x, w1, w2)


def se_reference(x, w1, w2):
    """Pure-JAX reference matching the PyTorch SELayer forward."""
    y = jnp.mean(x, axis=-1)                           # (B, C)
    hdn = jnp.tanh(y @ w1.T)                           # (B, HID)
    s = jax.nn.sigmoid(hdn @ w2.T)                     # (B, C)
    return x * s[:, :, None]


if __name__ == "__main__":
    key = jax.random.PRNGKey(0)
    kx, k1, k2 = jax.random.split(key, 3)

    # Small shapes consistent with the module: (B, C, H), hidden = 32 (fixed
    # by the module).  H = 128 keeps output stores lane-dense; C multiple of 8.
    B, C, H, HID = 2, 8, 128, 32

    x = jax.random.normal(kx, (B, C, H), dtype=jnp.float32)
    # PyTorch-style Linear init: U(-1/sqrt(fan_in), 1/sqrt(fan_in)), no bias.
    b1 = 1.0 / (C ** 0.5)
    w1 = jax.random.uniform(k1, (HID, C), minval=-b1, maxval=b1, dtype=jnp.float32)
    b2 = 1.0 / (HID ** 0.5)
    w2 = jax.random.uniform(k2, (C, HID), minval=-b2, maxval=b2, dtype=jnp.float32)

    out = se_layer(x, w1, w2)
    out = jax.block_until_ready(out)

    ref = se_reference(x, w1, w2)
    assert out.shape == (B, C, H)
    assert jnp.allclose(out, ref, atol=1e-5, rtol=1e-5)

    print("KERNEL_OK")
</pallas_src>

<mosaic_0001>
module attributes {stable_mosaic.version = 11 : i64} {
  func.func @_se_kernel(%arg0: i32, %arg1: memref<1x8x128xf32, #tpu.memory_space<vmem>>, %arg2: memref<32x8xf32, #tpu.memory_space<vmem>>, %arg3: memref<8x32xf32, #tpu.memory_space<vmem>>, %arg4: memref<1x8x128xf32, #tpu.memory_space<vmem>>) attributes {dimension_semantics = [#tpu.dimension_semantics<parallel>], iteration_bounds = array<i64: 2>, scalar_prefetch = 0 : i64, scratch_operands = 0 : i64, tpu.core_type = #tpu.core_type<tc>, window_params = [{transform_indices = @transform_0, window_bounds = array<i64: 1, 8, 128>}, {pipeline_mode = #tpu.pipeline_mode<synchronous>, transform_indices = @transform_1, window_bounds = array<i64: 32, 8>}, {pipeline_mode = #tpu.pipeline_mode<synchronous>, transform_indices = @transform_2, window_bounds = array<i64: 8, 32>}, {transform_indices = @transform_3, window_bounds = array<i64: 1, 8, 128>}]} {
    %c0 = arith.constant 0 : index
    %c0_0 = arith.constant 0 : index
    %c0_1 = arith.constant 0 : index
    %0 = vector.load %arg1[%c0, %c0_0, %c0_1] : memref<1x8x128xf32, #tpu.memory_space<vmem>>, vector<1x8x128xf32>
    %1 = vector.shape_cast %0 : vector<1x8x128xf32> to vector<8x128xf32>
    %cst = arith.constant dense<0.000000e+00> : vector<8xf32>
    %2 = vector.multi_reduction <add>, %1, %cst [1] : vector<8x128xf32> to vector<8xf32>
    %3 = vector.shape_cast %2 : vector<8xf32> to vector<8x1xf32>
    %cst_2 = arith.constant 7.812500e-03 : f32
    %4 = vector.broadcast %cst_2 : f32 to vector<8x1xf32>
    %5 = arith.mulf %3, %4 : vector<8x1xf32>
    %c0_3 = arith.constant 0 : index
    %c0_4 = arith.constant 0 : index
    %6 = vector.load %arg2[%c0_3, %c0_4] : memref<32x8xf32, #tpu.memory_space<vmem>>, vector<32x8xf32>
    %cst_5 = arith.constant dense<0.000000e+00> : vector<32x1xf32>
    %7 = tpu.matmul %6, %5, %cst_5 {dimension_numbers = #tpu.dot_dimension_numbers<[1], [0], [0], [1], [0, 0, 1, 1], [], []>} : vector<32x8xf32>, vector<8x1xf32>, vector<32x1xf32> -> vector<32x1xf32>
    %8 = math.tanh %7 : vector<32x1xf32>
    %c0_6 = arith.constant 0 : index
    %c0_7 = arith.constant 0 : index
    %9 = vector.load %arg3[%c0_6, %c0_7] : memref<8x32xf32, #tpu.memory_space<vmem>>, vector<8x32xf32>
    %cst_8 = arith.constant dense<0.000000e+00> : vector<8x1xf32>
    %10 = tpu.matmul %9, %8, %cst_8 {dimension_numbers = #tpu.dot_dimension_numbers<[1], [0], [0], [1], [0, 0, 1, 1], [], []>} : vector<8x32xf32>, vector<32x1xf32>, vector<8x1xf32> -> vector<8x1xf32>
    %11 = arith.negf %10 : vector<8x1xf32>
    %12 = math.exp %11 : vector<8x1xf32>
    %cst_9 = arith.constant 1.000000e+00 : f32
    %13 = vector.broadcast %cst_9 : f32 to vector<8x1xf32>
    %14 = arith.addf %13, %12 : vector<8x1xf32>
    %15 = arith.divf %13, %14 : vector<8x1xf32>
    %c0_10 = arith.constant 0 : index
    %c0_11 = arith.constant 0 : index
    %c0_12 = arith.constant 0 : index
    %16 = vector.load %arg1[%c0_10, %c0_11, %c0_12] : memref<1x8x128xf32, #tpu.memory_space<vmem>>, vector<1x8x128xf32>
    %17 = vector.shape_cast %16 : vector<1x8x128xf32> to vector<8x128xf32>
    %18 = vector.broadcast %15 : vector<8x1xf32> to vector<8x128xf32>
    %19 = arith.mulf %17, %18 : vector<8x128xf32>
    %c0_13 = arith.constant 0 : index
    %c0_14 = arith.constant 0 : index
    %c0_15 = arith.constant 0 : index
    %20 = vector.load %arg4[%c0_13, %c0_14, %c0_15] : memref<1x8x128xf32, #tpu.memory_space<vmem>>, vector<1x8x128xf32>
    %21 = vector.shape_cast %20 : vector<1x8x128xf32> to vector<8x128xf32>
    %22 = vector.shape_cast %19 : vector<8x128xf32> to vector<1x8x128xf32>
    tpu.vector_store %arg4[%c0_13, %c0_14, %c0_15], %22 {strides = array<i32>} : memref<1x8x128xf32, #tpu.memory_space<vmem>>, vector<1x8x128xf32>,
    return
  }
  func.func @transform_0(%arg0: i32) -> (i32, i32, i32) {
    %c0_i32 = arith.constant 0 : i32
    %c0_i32_0 = arith.constant 0 : i32
    %c0_i32_1 = arith.constant 0 : i32
    return %arg0, %c0_i32, %c0_i32_0 : i32, i32, i32
  }
  func.func @transform_1(%arg0: i32) -> (i32, i32) {
    %c0_i32 = arith.constant 0 : i32
    %c0_i32_0 = arith.constant 0 : i32
    %c0_i32_1 = arith.constant 0 : i32
    return %c0_i32, %c0_i32_0 : i32, i32
  }
  func.func @transform_2(%arg0: i32) -> (i32, i32) {
    %c0_i32 = arith.constant 0 : i32
    %c0_i32_0 = arith.constant 0 : i32
    %c0_i32_1 = arith.constant 0 : i32
    return %c0_i32, %c0_i32_0 : i32, i32
  }
  func.func @transform_3(%arg0: i32) -> (i32, i32, i32) {
    %c0_i32 = arith.constant 0 : i32
    %c0_i32_0 = arith.constant 0 : i32
    %c0_i32_1 = arith.constant 0 : i32
    return %arg0, %c0_i32, %c0_i32_0 : i32, i32, i32
  }
}

</mosaic_0001>

<bundles_post_ra>
// kernel: tpu_custom_call.1
= control target key start
LH: loop header
LB: loop body
LE: loop exit
PB: predicated region body
PF: predicated region fallthrough
CT: control target
= control target key end

     0   :  { %8 = vsyncpa [#allocation3], 0  ;;  %s725_s0 = inlined_call_operand.vmem [shape: f32[2,8,128], index: 0, kind: input, shape index: {}]   ;;  %s726_s1 = inlined_call_operand.vmem [shape: f32[32,8], index: 1, kind: input, shape index: {}]   ;;  %s727_s2 = inlined_call_operand.vmem [shape: f32[8,32], index: 2, kind: input, shape index: {}]   ;;  %s728_s3 = inlined_call_operand.hbm [shape: f32[2,8,128], index: 3, kind: output, shape index: {}]  }
   0x1   :  { %10 = vsyncpa [#allocation3 + $0x1], 0  ;;  %s623_s12 = smov 0   ;;  %s625_s13 = smov 0  }
   0x2   :  { %s627_s14 = smov 0   ;;  %s629_s15 = smov 0  }
   0x3 LB: > { %s644_s16 = sadd.s32 4294967295, %s597_s15   ;;  %s437_s17 = sadd.s32 4294967294, %s597_s15   ;;  %s597_s15 = sphi %s629_s15, %s734_s15   ;;  %s593_s14 = sphi %s627_s14, %s733_s14   ;;  %s589_s13 = sphi %s625_s13, %s732_s13   ;;  %s585_s12 = sphi %s623_s12, %s731_s12  }
   0x4   : > { %s648_s18 = sadd.s32 1, %s597_s15   ;;  %s91_s19 = sadd.s32 1, %s593_s14 }
   0x5   : > { %s88_s20 = ssub.s32 %s597_s15, %s648_s18  ;;  %p101_p0 = scmp.ne.s32.totalorder %s593_s14, %s589_s13 }
   0x6   : > { %p89_p1 = scmp.eq.s32.totalorder %s88_s20, 0  ;;  %p102_p2 = scmp.eq.s32.totalorder %s644_s16, 1 }
   0x7   : > { %p107_p3 = scmp.ne.s32.totalorder %s589_s13, %s585_s12  ;;  %p108_p4 = scmp.eq.s32.totalorder %s437_s17, 1 }
   0x8   : > { %s659_s21 = scalar_select %p89_p1, %s593_s14, %s91_s19  }
   0x9   : > { %p661_p5 = por %p102_p2, %p101_p0  ;;  %p665_p6 = por %p108_p4, %p107_p3 }
   0xa   : > { %p440_p7 = scmp.ge.s32.totalorder %s597_s15, 1  ;;  %p139_p8 = scmp.lt.s32.totalorder %s597_s15, 3 }
   0xc   : > { %p140_p9 = pnand %p440_p7, %p139_p8 }
   0xd   : > { %p162_p10 = scmp.lt.s32.totalorder (!%p140_p9), %s644_s16, 1  ;;  %s159_s17 = sand.u32 (!%p140_p9), 1, %s589_s13  }
   0xe   : > { %143 = sbr.rel (%p140_p9) target bundleno = 748 (0x2ec), region = 32  ;;  %s441_s19 = sshll.u32 (!%p140_p9), %s159_s17, 3 }
   0xf   : > { %s450_s20 = sshll.u32 (!%p140_p9), %s644_s16, 7  ;;  %s365_s29 = scalar_lea.sflag (!%p140_p9), [#allocation3], %s159_s17 }
  0x10   : > { %s602_s4 = smov (!%p140_p9), [#allocation2]  }
  0x11   : > { %s541_s5 = sshll.u32 (!%p140_p9), %s602_s4, 4  ;;  %s542_s5 = int_to_ptr.vmem [resolvable:$false] %s541_s5 }
  0x13   : > { %s163_s24 = scalar_select %p162_p10, %s644_s16, 1  ;;  %v170_v1 = vld [vmem:[%s726_s1] sm:$0xff]  ;;  %vm174_vm0 = vcmask 64512   ;;  %v171_v4 = vld [vmem:[%s726_s1 + $0x8] sm:$0xff]  ;;  %v172_v5 = vld [vmem:[%s726_s1 + $0x10] sm:$0xff]  ;;  %v599_v7 = vmov 0.0  }
  0x14   : > { %465 = vmatprep.mubr.msk.f32.mxu0 %vm174_vm0, %v170_v1  ;;  %v173_v6 = vld [vmem:[%s726_s1 + $0x18] sm:$0xff]  ;;  %471 = vmatprep.subr.mxu1 %v599_v7  ;;  %vm600_vm1 = vmmov 0   ;;  %v276_v15 = vld [vmem:[%s727_s2] sm:$0xff]  ;;  %vm277_vm2 = vcmask 261120   ;;  %v601_v17 = vmov 0   ;;  %s543_s16 = scalar_lea.vmem %s542_s5, 256 }
  0x15   : > { %s442_s25 = sshll.u32 %s163_s24, 3  ;;  %479 = vmatprep.mubr.msk.f32.mxu1 %vm600_vm1, %v599_v7  ;;  %524 = vset.pattern.permute.xlu0 %v601_v17  ;;  %s161_s24 = scalar_lea.vmem [#allocation2], %s441_s19 }
  0x16   : > { %s165_s28 = scalar_lea.vmem %s725_s0, %s442_s25  ;;  %s378_s25 = sshll.u32 %s161_s24, 4  ;;  %s379_s25 = int_to_ptr.vmem [resolvable:$true] %s378_s25 }
  0x17   : > { %v166_v0 = vld [vmem:[%s165_s28] sm:$0xff]  ;;  %s376_s28 = scalar_lea.hbm %s728_s3, %s450_s20  ;;  %s537_s30 = scalar_lea.vmem %s379_s25, 128 }
  0x18   : > { %167 = vadd.xlane.f32.xlu0 %v166_v0  ;;  %p538_p11 = scmp.ne.s32.totalorder %s379_s25, %s537_s30  ;;  %p544_p0 = scmp.lt.s32.totalorder %s379_s25, %s542_s5 }
  0x19   : > { %p545_p1 = scmp.lt.s32.totalorder %s543_s16, %s537_s30 }
  0x1a   : > { %p539_p12 = pnand %p538_p11, %p661_p5 }
  0x1b   : > { %p546_p2 = por %p545_p1, %p544_p0 }
  0x1c   : > { %p540_p13 = pneg %p539_p12 }
  0x1e   : > { %p547_p3 = pnand %p546_p2, %p540_p13 }
  0xa1   : > { %v168_v2 = vpop.xlane.xlu0 %167 }
  0xa2   : > { %v169_v3 = vmul.f32 0.0078125, %v168_v2 }
  0xa4   : > { %463 = vmatprep.subr.mxu0 %v169_v3 }
  0xa5   : > { %464 = vmatpush3.msra.mxu0 %v169_v3 }
  0xa6   : > { %466 = vmatmul.mubr.msk.f32.vlgmr.msra.gmra.mxu0 %vm174_vm0, %v171_v4 }
  0xa7   : > { %468 = vmatprep.mubr.msk.f32.mxu0 %vm174_vm0, %v172_v5 }
  0xaa   : > { %469 = vmatmul.mubr.msk.f32.gmra.mxu0 %vm174_vm0, %v173_v6 }
 0x166   : > { %v467_v8 = vpop.f32.mrf.mxu0 }
 0x168   : > { %v253_v9 = vpop.f32.mrf.mxu0 }
 0x16a   : > { %v470_v10 = vpop.f32.mrf.mxu0 }
 0x16b   : > { %525 = vtanh.f32 %v470_v10 }
 0x16c   : > { %v263_v11 = vpop.f32.mrf.mxu0 }
 0x16d   : > { %527 = vtanh.f32 %v263_v11 }
 0x16e   : > { %529 = vtanh.f32 %v467_v8 }
 0x16f   : > { %531 = vtanh.f32 %v253_v9 }
 0x178   : > { %v526_v12 = vpop.eup %525 }
 0x179   : > { %472 = vmatpush3.msra.mxu1 %v526_v12 }
 0x17a   : > { %v528_v13 = vpop.eup %527  ;;  %473 = vmatprep.subr.mxu1 %v599_v7 }
 0x17b   : > { %474 = vmatpush3.msra.mxu1 %v528_v13  ;;  %v530_v14 = vpop.eup %529 }
 0x17c   : > { %475 = vmatprep.subr.mxu1 %v599_v7  ;;  %v532_v16 = vpop.eup %531 }
 0x17d   : > { %476 = vmatpush3.msra.mxu1 %v530_v14 }
 0x17e   : > { %477 = vmatprep.subr.mxu1 %v599_v7 }
 0x17f   : > { %478 = vmatpush3.msra.mxu1 %v532_v16 }
 0x180   : > { %480 = vmatmul.mubr.msk.f32.vlgmr.msra.gmra.mxu1 %vm277_vm2, %v276_v15 }
 0x240   : > { %v347_v18 = vpop.f32.mrf.mxu1 }
 0x241   : > { %v448_v19 = vmul.f32 -1.442695, %v347_v18 }
 0x242   : > { %v481_v20 = vpop.f32.mrf.mxu1 }
 0x243   : > { %533 = vpow2.f32 %v448_v19 }
 0x250   : > { %v534_v21 = vpop.eup %533 }
 0x251   : > { %v354_v22 = vadd.f32 1.0, %v534_v21 }
 0x253   : > { %535 = vrcp.f32 %v354_v22 }
 0x260   : > { %v536_v23 = vpop.eup %535 }
 0x261   : > { %359 = vperm.xlu0 %524, %v536_v23  }
 0x2dc   : > { %v360_v24 = vpop.permute.xlu0 %359 }
 0x2dd   : > { %v362_v25 = vmul.f32 %v360_v24, %v166_v0 }
 0x2df   : > { %363 = vst [vmem:[%s161_s24] sm:$0xff] %v362_v25 }
 0x2e0   : > { %550 = shalt.err (!%p547_p3)
}
 0x2e1   : > { %s551_s6 = scalar_lea.hbm %s376_s28, 128  ;;  %s555_s9 = scalar_lea.hbm %s728_s3, 256 }
 0x2e2   : > { %p552_p4 = scmp.ne.s32.totalorder %s376_s28, %s551_s6  ;;  %p556_p9 = scmp.lt.s32.totalorder %s376_s28, %s728_s3 }
 0x2e3   : > { %p557_p10 = scmp.lt.s32.totalorder %s555_s9, %s551_s6 }
 0x2e4   : > { %p553_p7 = pnand %p552_p4, %p661_p5 }
 0x2e5   : > { %p558_p11 = por %p557_p10, %p556_p9 }
 0x2e6   : > { %p554_p8 = pneg %p553_p7 }
 0x2e8   : > { %p559_p12 = pnand %p558_p11, %p554_p8 }
 0x2ea   : > { %562 = shalt.err (!%p559_p12)
}
 0x2eb   : > { %482 = dma.vmem_to_hbm [thread:$0]  (%p661_p5), %s379_s25, 128, %s376_s28, %s365_s29  }
 0x2ec PF: > { %p488_p13 = scmp.ge.s32.totalorder %s597_s15, 2  ;;  %s390_s17 = sand.u32 1, %s585_s12  }
 0x2ed   : > { %s391_s19 = scalar_lea.sflag [#allocation3], %s390_s17 }
 0x2ee   : > { %p485_p0 = pnand %p488_p13, %p665_p6 }
 0x2f0   : > { %p486_p1 = pneg %p485_p0 }
 0x2f2   : > { %580 = dma.done.wait (%p486_p1), %s391_s19, 128  }
 0x2f3   : > { %582 = vsyncadd (%p486_p1), %s391_s19, 4294967168  ;;  %p13_p2 = scmp.ge.s32.totalorder %s648_s18, 4   ;;  %s731_s12 = smov %s589_s13 }
 0x2f4   : > { %s732_s13 = smov %s593_s14  ;;  %s733_s14 = smov %s659_s21 }
 0x2f5   : > { %s734_s15 = smov %s648_s18  ;;  %15 = sbr.rel (!%p13_p2) target bundleno = 3 (0x3), region = 67 }
 0x2fa   :  { %396 = vsyncpa [#allocation3], 1 }
 0x2fb   :  { %398 = vsyncpa [#allocation3 + $0x1], 1 }

</bundles_post_ra>
